<compile_context>
chip_gen: v7x
topology: tpu7x:2x2x1
jax: 0.10.0
libtpu: 0.0.40
codegen_flags: <defaults>
</compile_context>

<pallas_src>
import jax
import jax.numpy as jnp
from jax.experimental import pallas as pl
from jax.experimental.pallas import tpu as pltpu


def _round_up(n, m):
    return ((n + m - 1) // m) * m


def _pad2d(a, rows, cols):
    r, c = a.shape
    if r == rows and c == cols:
        return a
    return jnp.pad(a, ((0, rows - r), (0, cols - c)))


def _make_resblock_kernel(*, has_projection, apply_tanh, operand_dtype):
    """Build the fused kernel for one batch tile.

    out = x @ W + b + (x @ Ws  |  x)   then optional tanh.
    Matmuls accumulate in f32; elementwise work stays in f32.
    """

    def _epilogue(acc, b_ref, o_ref):
        acc = acc + b_ref[...]
        if apply_tanh:
            acc = jnp.tanh(acc)
        o_ref[...] = acc.astype(o_ref.dtype)

    if has_projection:
        def kernel(x_ref, w_ref, ws_ref, b_ref, o_ref):
            x = x_ref[...]
            xm = x.astype(operand_dtype)
            acc = jnp.dot(xm, w_ref[...], preferred_element_type=jnp.float32)
            acc = acc + jnp.dot(xm, ws_ref[...],
                                preferred_element_type=jnp.float32)
            _epilogue(acc, b_ref, o_ref)
    else:
        def kernel(x_ref, w_ref, b_ref, o_ref):
            x = x_ref[...]
            xm = x.astype(operand_dtype)
            acc = jnp.dot(xm, w_ref[...], preferred_element_type=jnp.float32)
            # identity shortcut (in_features == out_features): exact f32 add
            acc = acc + x.astype(jnp.float32)
            _epilogue(acc, b_ref, o_ref)

    return kernel


def residual_block_forward(x, w, b, ws=None, *, is_final=False,
                           tile_batch=256, matmul_dtype=None):
    """Fused ResidualBlock forward.

    x : (B, in_features) f32
    w : (in_features, out_features)  -- transpose of PyTorch weight
    b : (out_features,)
    ws: (in_features, out_features) projection-shortcut weight, or None for
        the identity shortcut (requires in_features == out_features).
    matmul_dtype: optionally jnp.bfloat16 to run MXU operands in bf16
        (f32 accumulation); default keeps everything f32.
    """
    B, in_dim = x.shape
    k_w, out_dim = w.shape
    assert k_w == in_dim, "weight must be stored as (in_features, out_features)"
    has_projection = ws is not None
    if not has_projection:
        assert in_dim == out_dim, "identity shortcut requires in == out"

    # Pad K and N to lane width for full-width MXU pushes / lane-dense stores.
    K = _round_up(in_dim, 128)
    N = _round_up(out_dim, 128)

    # Batch tiling: one grid step for small batches, bounded tiles for large.
    if B <= tile_batch:
        tb = _round_up(B, 8)
        M = tb
    else:
        tb = tile_batch            # multiple of 8 by construction (256)
        M = _round_up(B, tb)

    operand_dtype = matmul_dtype if matmul_dtype is not None else x.dtype

    x_p = _pad2d(x, M, K)
    w_p = _pad2d(w, K, N).astype(operand_dtype)
    b_p = _pad2d(b.reshape(1, -1), 1, N)

    args = [x_p, w_p]
    in_specs = [
        pl.BlockSpec((tb, K), lambda i: (i, 0)),   # x: pipelined over batch
        pl.BlockSpec((K, N), lambda i: (0, 0)),    # W: resident
    ]
    if has_projection:
        ws_p = _pad2d(ws, K, N).astype(operand_dtype)
        args.append(ws_p)
        in_specs.append(pl.BlockSpec((K, N), lambda i: (0, 0)))  # Ws: resident
    args.append(b_p)
    in_specs.append(pl.BlockSpec((1, N), lambda i: (0, 0)))      # b: resident

    kernel = _make_resblock_kernel(has_projection=has_projection,
                                   apply_tanh=not is_final,
                                   operand_dtype=operand_dtype)

    out_p = pl.pallas_call(
        kernel,
        out_shape=jax.ShapeDtypeStruct((M, N), x.dtype),
        grid_spec=pl.GridSpec(
            grid=(M // tb,),
            in_specs=in_specs,
            out_specs=pl.BlockSpec((tb, N), lambda i: (i, 0)),
        ),
        compiler_params=pltpu.CompilerParams(
            dimension_semantics=("parallel",),
            vmem_limit_bytes=32 * 1024 * 1024,
        ),
    )(*args)

    return out_p[:B, :out_dim]


def residual_block_reference(x, w, b, ws=None, *, is_final=False):
    """Plain-JAX reference matching the PyTorch module."""
    out = x @ w + b
    out = out + (x @ ws if ws is not None else x)
    return out if is_final else jnp.tanh(out)


if __name__ == "__main__":
    key = jax.random.PRNGKey(0)
    batch, in_features, out_features = 8, 32, 48

    # ---- Case 1: projection shortcut (in != out), non-final (tanh) ----
    k_w, k_b, k_ws, k_x, k_rest = jax.random.split(key, 5)
    bound = 1.0 / (in_features ** 0.5)
    w = jax.random.uniform(k_w, (in_features, out_features), jnp.float32,
                           -bound, bound)
    b = jax.random.uniform(k_b, (out_features,), jnp.float32, -bound, bound)
    ws = jax.random.uniform(k_ws, (in_features, out_features), jnp.float32,
                            -bound, bound)
    x = jax.random.normal(k_x, (batch, in_features), jnp.float32)

    out = residual_block_forward(x, w, b, ws, is_final=False)
    out = jax.block_until_ready(out)
    ref = residual_block_reference(x, w, b, ws, is_final=False)
    assert out.shape == (batch, out_features)
    assert jnp.allclose(out, ref, atol=1e-5, rtol=1e-5), "projection mismatch"

    # ---- Case 2: identity shortcut (in == out), final (no activation) ----
    dim = 32
    k_w2, k_b2, k_x2 = jax.random.split(k_rest, 3)
    bound2 = 1.0 / (dim ** 0.5)
    w2 = jax.random.uniform(k_w2, (dim, dim), jnp.float32, -bound2, bound2)
    b2 = jax.random.uniform(k_b2, (dim,), jnp.float32, -bound2, bound2)
    x2 = jax.random.normal(k_x2, (batch, dim), jnp.float32)

    out2 = residual_block_forward(x2, w2, b2, None, is_final=True)
    out2 = jax.block_until_ready(out2)
    ref2 = residual_block_reference(x2, w2, b2, None, is_final=True)
    assert out2.shape == (batch, dim)
    assert jnp.allclose(out2, ref2, atol=1e-5, rtol=1e-5), "identity mismatch"

    print("KERNEL_OK")
</pallas_src>

<mosaic_0001>
module attributes {stable_mosaic.version = 11 : i64} {
  func.func @kernel(%arg0: i32, %arg1: memref<8x128xf32, #tpu.memory_space<vmem>>, %arg2: memref<128x128xf32, #tpu.memory_space<vmem>>, %arg3: memref<128x128xf32, #tpu.memory_space<vmem>>, %arg4: memref<1x128xf32, #tpu.memory_space<vmem>>, %arg5: memref<8x128xf32, #tpu.memory_space<vmem>>) attributes {dimension_semantics = [#tpu.dimension_semantics<parallel>], iteration_bounds = array<i64: 1>, scalar_prefetch = 0 : i64, scratch_operands = 0 : i64, tpu.core_type = #tpu.core_type<tc>, window_params = [{transform_indices = @transform_0, window_bounds = array<i64: 8, 128>}, {pipeline_mode = #tpu.pipeline_mode<synchronous>, transform_indices = @transform_1, window_bounds = array<i64: 128, 128>}, {pipeline_mode = #tpu.pipeline_mode<synchronous>, transform_indices = @transform_2, window_bounds = array<i64: 128, 128>}, {pipeline_mode = #tpu.pipeline_mode<synchronous>, transform_indices = @transform_3, window_bounds = array<i64: 1, 128>}, {transform_indices = @transform_4, window_bounds = array<i64: 8, 128>}]} {
    %c0 = arith.constant 0 : index
    %c0_0 = arith.constant 0 : index
    %0 = vector.load %arg1[%c0, %c0_0] : memref<8x128xf32, #tpu.memory_space<vmem>>, vector<8x128xf32>
    %c0_1 = arith.constant 0 : index
    %c0_2 = arith.constant 0 : index
    %1 = vector.load %arg2[%c0_1, %c0_2] : memref<128x128xf32, #tpu.memory_space<vmem>>, vector<128x128xf32>
    %cst = arith.constant dense<0.000000e+00> : vector<8x128xf32>
    %2 = tpu.matmul %0, %1, %cst {dimension_numbers = #tpu.dot_dimension_numbers<[1], [0], [0], [1], [0, 0, 1, 1], [], []>} : vector<8x128xf32>, vector<128x128xf32>, vector<8x128xf32> -> vector<8x128xf32>
    %c0_3 = arith.constant 0 : index
    %c0_4 = arith.constant 0 : index
    %3 = vector.load %arg3[%c0_3, %c0_4] : memref<128x128xf32, #tpu.memory_space<vmem>>, vector<128x128xf32>
    %cst_5 = arith.constant dense<0.000000e+00> : vector<8x128xf32>
    %4 = tpu.matmul %0, %3, %cst_5 {dimension_numbers = #tpu.dot_dimension_numbers<[1], [0], [0], [1], [0, 0, 1, 1], [], []>} : vector<8x128xf32>, vector<128x128xf32>, vector<8x128xf32> -> vector<8x128xf32>
    %5 = arith.addf %2, %4 : vector<8x128xf32>
    %c0_6 = arith.constant 0 : index
    %c0_7 = arith.constant 0 : index
    %6 = vector.load %arg4[%c0_6, %c0_7] : memref<1x128xf32, #tpu.memory_space<vmem>>, vector<1x128xf32>
    %7 = vector.broadcast %6 : vector<1x128xf32> to vector<8x128xf32>
    %8 = arith.addf %5, %7 : vector<8x128xf32>
    %9 = math.tanh %8 : vector<8x128xf32>
    %c0_8 = arith.constant 0 : index
    %c0_9 = arith.constant 0 : index
    %10 = vector.load %arg5[%c0_8, %c0_9] : memref<8x128xf32, #tpu.memory_space<vmem>>, vector<8x128xf32>
    tpu.vector_store %arg5[%c0_8, %c0_9], %9 {strides = array<i32>} : memref<8x128xf32, #tpu.memory_space<vmem>>, vector<8x128xf32>,
    return
  }
  func.func @transform_0(%arg0: i32) -> (i32, i32) {
    %c0_i32 = arith.constant 0 : i32
    %c0_i32_0 = arith.constant 0 : i32
    return %arg0, %c0_i32 : i32, i32
  }
  func.func @transform_1(%arg0: i32) -> (i32, i32) {
    %c0_i32 = arith.constant 0 : i32
    %c0_i32_0 = arith.constant 0 : i32
    %c0_i32_1 = arith.constant 0 : i32
    return %c0_i32, %c0_i32_0 : i32, i32
  }
  func.func @transform_2(%arg0: i32) -> (i32, i32) {
    %c0_i32 = arith.constant 0 : i32
    %c0_i32_0 = arith.constant 0 : i32
    %c0_i32_1 = arith.constant 0 : i32
    return %c0_i32, %c0_i32_0 : i32, i32
  }
  func.func @transform_3(%arg0: i32) -> (i32, i32) {
    %c0_i32 = arith.constant 0 : i32
    %c0_i32_0 = arith.constant 0 : i32
    %c0_i32_1 = arith.constant 0 : i32
    return %c0_i32, %c0_i32_0 : i32, i32
  }
  func.func @transform_4(%arg0: i32) -> (i32, i32) {
    %c0_i32 = arith.constant 0 : i32
    %c0_i32_0 = arith.constant 0 : i32
    return %arg0, %c0_i32 : i32, i32
  }
}

</mosaic_0001>

<bundles_post_ra>
// kernel: tpu_custom_call.1
= control target key start
LH: loop header
LB: loop body
LE: loop exit
PB: predicated region body
PF: predicated region fallthrough
CT: control target
= control target key end

     0   :  { %9 = vsyncpa [#allocation3], 0  ;;  %s621_s0 = inlined_call_operand.hbm [shape: f32[8,128], index: 0, kind: input, shape index: {}]   ;;  %s622_s1 = inlined_call_operand.hbm [shape: f32[128,128], index: 1, kind: input, shape index: {}]   ;;  %s623_s2 = inlined_call_operand.hbm [shape: f32[128,128], index: 2, kind: input, shape index: {}]   ;;  %s624_s3 = inlined_call_operand.vmem [shape: f32[1,128], index: 3, kind: input, shape index: {}]   ;;  %s625_s4 = inlined_call_operand.hbm [shape: f32[8,128], index: 4, kind: output, shape index: {}]  }
   0x1   :  { %10 = vsyncpa [#allocation6], 0 }
   0x2   :  { %11 = vsyncpa [#allocation4], 0  ;;  %s514_s15 = smov [#allocation5]   ;;  %s420_s19 = scalar_lea.hbm %s622_s1, 2048 }
   0x3   :  { %s27_s16 = sshll.u32 %s514_s15, 4  ;;  %p421_p0 = scmp.ne.s32.totalorder %s622_s1, %s420_s19  ;;  %s28_s16 = int_to_ptr.vmem [resolvable:$true] %s27_s16 }
   0x4   :  { %p424_p1 = scmp.lt.u32.totalorder %s420_s19, %s622_s1 }
   0x6   :  { %p426_p2 = pnand %p424_p1, %p421_p0 }
   0x8   :  { %429 = shalt.err (!%p426_p2)
}
   0x9   :  { %s430_s24 = scalar_lea.vmem %s28_s16, 2048  ;;  %p435_p4 = scmp.lt.s32.totalorder %s28_s16, %s28_s16 }
   0xa   :  { %p431_p3 = scmp.ne.s32.totalorder %s28_s16, %s430_s24  ;;  %p436_p5 = scmp.lt.s32.totalorder %s430_s24, %s430_s24 }
   0xc   :  { %p437_p6 = por %p436_p5, %p435_p4 }
   0xe   :  { %p438_p7 = pnand %p437_p6, %p431_p3 }
  0x10   :  { %441 = shalt.err (!%p438_p7)
}
  0x11   :  { %s515_s25 = smov 128   ;;  %s516_s26 = smov 8  }
  0x12   :  { %33 = dma.hbm_to_vmem [thread:$0]  %s622_s1, 2048, %s28_s16, [#allocation6], %s515_s25, %s515_s25, %s516_s26  }
  0x13   :  { %s517_s29 = smov [#allocation2]   ;;  %s518_s5 = smov [#allocation7]  }
  0x14   :  { %s18_s30 = sshll.u32 %s517_s29, 4  ;;  %s39_s6 = sshll.u32 %s518_s5, 4  ;;  %s19_s30 = int_to_ptr.vmem [resolvable:$true] %s18_s30  ;;  %s40_s6 = int_to_ptr.vmem [resolvable:$true] %s39_s6 }
  0x15   :  { %s442_s9 = scalar_lea.hbm %s621_s0, 128 }
  0x16   :  { %p443_p8 = scmp.ne.s32.totalorder %s621_s0, %s442_s9  ;;  %p446_p9 = scmp.lt.u32.totalorder %s442_s9, %s621_s0 }
  0x18   :  { %p448_p10 = pnand %p446_p9, %p443_p8 }
  0x1a   :  { %451 = shalt.err (!%p448_p10)
}
  0x1b   :  { %s452_s1 = scalar_lea.vmem %s19_s30, 128  ;;  %p457_p12 = scmp.lt.s32.totalorder %s19_s30, %s19_s30 }
  0x1c   :  { %p453_p11 = scmp.ne.s32.totalorder %s19_s30, %s452_s1  ;;  %p458_p13 = scmp.lt.s32.totalorder %s452_s1, %s452_s1 }
  0x1e   :  { %p459_p0 = por %p458_p13, %p457_p12 }
  0x20   :  { %p460_p1 = pnand %p459_p0, %p453_p11 }
  0x22   :  { %463 = shalt.err (!%p460_p1)
}
  0x23   :  { %21 = dma.hbm_to_vmem [thread:$0]  %s621_s0, 128, %s19_s30, [#allocation3]  }
  0x24   :  { %s464_s18 = scalar_lea.hbm %s623_s2, 2048 }
  0x25   :  { %p465_p2 = scmp.ne.s32.totalorder %s623_s2, %s464_s18  ;;  %p468_p3 = scmp.lt.u32.totalorder %s464_s18, %s623_s2 }
  0x27   :  { %p470_p4 = pnand %p468_p3, %p465_p2 }
  0x29   :  { %473 = shalt.err (!%p470_p4)
}
  0x2a   :  { %s474_s23 = scalar_lea.vmem %s40_s6, 2048  ;;  %p479_p6 = scmp.lt.s32.totalorder %s40_s6, %s40_s6 }
  0x2b   :  { %p475_p5 = scmp.ne.s32.totalorder %s40_s6, %s474_s23  ;;  %p480_p7 = scmp.lt.s32.totalorder %s474_s23, %s474_s23 }
  0x2d   :  { %p481_p8 = por %p480_p7, %p479_p6 }
  0x2f   :  { %p482_p9 = pnand %p481_p8, %p475_p5 }
  0x31   :  { %485 = shalt.err (!%p482_p9)
}
  0x32   :  { %45 = dma.hbm_to_vmem [thread:$0]  %s623_s2, 2048, %s40_s6, [#allocation6], %s515_s25, %s515_s25, %s516_s26  }
  0x33   :  { %508 = dma.done.wait [#allocation3], 128  }
  0x34   :  { %509 = vsyncadd [#allocation3], 4294967168 }
  0x35   :  { %510 = dma.done.wait [#allocation6], 4096  }
  0x36   :  { %511 = vsyncadd [#allocation6], 4294963200  ;;  %v519_v0 = vmov 0.0|0.0   ;;  %vm520_vm0 = vmmov 0   ;;  %v521_v1 = vmov 0.0   ;;  %v74_v2 = vld [vmem:[#allocation7] sm:$0xff] }
  0x37   :  { %361 = vmatprep.subr.bf16.mxu0 %v519_v0  ;;  %385 = vmatprep.subr.bf16.mxu1 %v519_v0  ;;  %v75_v3 = vld [vmem:[#allocation7 + $0x8] sm:$0xff]  ;;  %v58_v4 = vld [vmem:[#allocation5] sm:$0xff]  ;;  %v76_v7 = vld [vmem:[#allocation7 + $0x10] sm:$0xff]  ;;  %s522_s26 = smov [#allocation8]  }
  0x38   :  { %323 = vmatprep.mubr.msk.f32.mxu0 %vm520_vm0, %v521_v1  ;;  %358 = vmatprep.mubr.msk.f32.mxu1 %vm520_vm0, %v521_v1  ;;  %v362_v5 = vpack.c.bf16 %v75_v3, %v74_v2  ;;  %v59_v6 = vld [vmem:[#allocation5 + $0x8] sm:$0xff]  ;;  %v77_v8 = vld [vmem:[#allocation7 + $0x18] sm:$0xff]  ;;  %v60_v10 = vld [vmem:[#allocation5 + $0x10] sm:$0xff]  ;;  %s246_s27 = sshll.u32 %s522_s26, 4  ;;  %s247_s27 = int_to_ptr.vmem [resolvable:$true] %s246_s27 }
  0x39   :  { %v386_v9 = vpack.c.bf16 %v59_v6, %v58_v4  ;;  %v61_v11 = vld [vmem:[#allocation5 + $0x18] sm:$0xff]  ;;  %v365_v12 = vpack.c.bf16 %v77_v8, %v76_v7  ;;  %v78_v14 = vld [vmem:[#allocation7 + $0x20] sm:$0xff]  ;;  %v79_v15 = vld [vmem:[#allocation7 + $0x28] sm:$0xff]  ;;  %s486_s28 = scalar_lea.vmem %s247_s27, 128  ;;  %p491_p11 = scmp.lt.s32.totalorder %s247_s27, %s247_s27 }
  0x3a   :  { %363 = vmatpush3.bf16.msra.mxu0 %v362_v5  ;;  %v389_v13 = vpack.c.bf16 %v61_v11, %v60_v10  ;;  %v62_v16 = vld [vmem:[#allocation5 + $0x20] sm:$0xff]  ;;  %v63_v17 = vld [vmem:[#allocation5 + $0x28] sm:$0xff]  ;;  %v368_v18 = vpack.c.bf16 %v79_v15, %v78_v14  ;;  %v80_v20 = vld [vmem:[#allocation7 + $0x30] sm:$0xff]  ;;  %p487_p10 = scmp.ne.s32.totalorder %s247_s27, %s486_s28  ;;  %p492_p12 = scmp.lt.s32.totalorder %s486_s28, %s486_s28 }
  0x3b   :  { %387 = vmatpush3.bf16.msra.mxu1 %v386_v9  ;;  %364 = vmatprep.subr.bf16.mxu0 %v519_v0  ;;  %v392_v19 = vpack.c.bf16 %v63_v17, %v62_v16  ;;  %v81_v21 = vld [vmem:[#allocation7 + $0x38] sm:$0xff]  ;;  %v64_v22 = vld [vmem:[#allocation5 + $0x30] sm:$0xff]  ;;  %v82_v26 = vld [vmem:[#allocation7 + $0x40] sm:$0xff] }
  0x3c   :  { %388 = vmatprep.subr.bf16.mxu1 %v519_v0  ;;  %v65_v23 = vld [vmem:[#allocation5 + $0x38] sm:$0xff]  ;;  %v371_v24 = vpack.c.bf16 %v81_v21, %v80_v20  ;;  %v83_v27 = vld [vmem:[#allocation7 + $0x48] sm:$0xff]  ;;  %v66_v28 = vld [vmem:[#allocation5 + $0x40] sm:$0xff]  ;;  %p493_p13 = por %p492_p12, %p491_p11 }
  0x3d   :  { %v395_v25 = vpack.c.bf16 %v65_v23, %v64_v22  ;;  %v67_v29 = vld [vmem:[#allocation5 + $0x48] sm:$0xff]  ;;  %v374_v30 = vpack.c.bf16 %v83_v27, %v82_v26  ;;  %v84_v32 = vld [vmem:[#allocation7 + $0x50] sm:$0xff]  ;;  %v85_v33 = vld [vmem:[#allocation7 + $0x58] sm:$0xff] }
  0x3e   :  { %366 = vmatpush3.bf16.msra.mxu0 %v365_v12  ;;  %v398_v31 = vpack.c.bf16 %v67_v29, %v66_v28  ;;  %v68_v34 = vld [vmem:[#allocation5 + $0x50] sm:$0xff]  ;;  %v69_v35 = vld [vmem:[#allocation5 + $0x58] sm:$0xff]  ;;  %v377_v36 = vpack.c.bf16 %v85_v33, %v84_v32  ;;  %v86_v38 = vld [vmem:[#allocation7 + $0x60] sm:$0xff]  ;;  %p494_p0 = pnand %p493_p13, %p487_p10 }
  0x3f   :  { %390 = vmatpush3.bf16.msra.mxu1 %v389_v13  ;;  %367 = vmatprep.subr.bf16.mxu0 %v519_v0  ;;  %v401_v37 = vpack.c.bf16 %v69_v35, %v68_v34  ;;  %v87_v39 = vld [vmem:[#allocation7 + $0x68] sm:$0xff]  ;;  %v70_v40 = vld [vmem:[#allocation5 + $0x60] sm:$0xff]  ;;  %v88_v44 = vld [vmem:[#allocation7 + $0x70] sm:$0xff] }
  0x40   :  { %391 = vmatprep.subr.bf16.mxu1 %v519_v0  ;;  %v71_v41 = vld [vmem:[#allocation5 + $0x68] sm:$0xff]  ;;  %v380_v42 = vpack.c.bf16 %v87_v39, %v86_v38  ;;  %v89_v45 = vld [vmem:[#allocation7 + $0x78] sm:$0xff]  ;;  %v72_v46 = vld [vmem:[#allocation5 + $0x70] sm:$0xff] }
  0x41   :  { %v404_v43 = vpack.c.bf16 %v71_v41, %v70_v40  ;;  %v73_v47 = vld [vmem:[#allocation5 + $0x78] sm:$0xff]  ;;  %v383_v48 = vpack.c.bf16 %v89_v45, %v88_v44 }
  0x42   :  { %369 = vmatpush3.bf16.msra.mxu0 %v368_v18  ;;  %v407_v49 = vpack.c.bf16 %v73_v47, %v72_v46  ;;  %v57_v50 = vld [vmem:[#allocation2] sm:$0xff] }
  0x43   :  { %393 = vmatpush3.bf16.msra.mxu1 %v392_v19  ;;  %370 = vmatprep.subr.bf16.mxu0 %v519_v0  ;;  %v256_v53 = vld [vmem:[%s624_s3] ss:$0 sm:$0xff] }
  0x44   :  { %394 = vmatprep.subr.bf16.mxu1 %v519_v0 }
  0x46   :  { %372 = vmatpush3.bf16.msra.mxu0 %v371_v24 }
  0x47   :  { %396 = vmatpush3.bf16.msra.mxu1 %v395_v25  ;;  %373 = vmatprep.subr.bf16.mxu0 %v519_v0 }
  0x48   :  { %397 = vmatprep.subr.bf16.mxu1 %v519_v0 }
  0x4a   :  { %375 = vmatpush3.bf16.msra.mxu0 %v374_v30 }
  0x4b   :  { %399 = vmatpush3.bf16.msra.mxu1 %v398_v31  ;;  %376 = vmatprep.subr.bf16.mxu0 %v519_v0 }
  0x4c   :  { %400 = vmatprep.subr.bf16.mxu1 %v519_v0 }
  0x4e   :  { %378 = vmatpush3.bf16.msra.mxu0 %v377_v36 }
  0x4f   :  { %402 = vmatpush3.bf16.msra.mxu1 %v401_v37  ;;  %379 = vmatprep.subr.bf16.mxu0 %v519_v0 }
  0x50   :  { %403 = vmatprep.subr.bf16.mxu1 %v519_v0 }
  0x52   :  { %381 = vmatpush3.bf16.msra.mxu0 %v380_v42 }
  0x53   :  { %405 = vmatpush3.bf16.msra.mxu1 %v404_v43  ;;  %382 = vmatprep.subr.bf16.mxu0 %v519_v0 }
  0x54   :  { %406 = vmatprep.subr.bf16.mxu1 %v519_v0 }
  0x56   :  { %384 = vmatpush3.bf16.msra.mxu0 %v383_v48 }
  0x57   :  { %408 = vmatpush3.bf16.msra.mxu1 %v407_v49 }
  0x59   :  { %324 = vmatmul.mubr.f32.vlgmr.msra.gmra.mrb[0].mxu0 %v57_v50 }
  0x5a   :  { %359 = vmatmul.mubr.f32.vlgmr.msra.gmra.mrb[0].mxu1 %v57_v50 }
 0x12c   :  { %v156_v51 = vpop.f32.mrb[0].mxu0 }
 0x12d   :  { %v226_v52 = vpop.f32.mrb[0].mxu1  ;;  %v325_v54 = vpop.f32.mrb[1].mxu0 }
 0x12e   :  { %v227_v55 = vadd.f32 %v226_v52, %v156_v51  ;;  %v360_v56 = vpop.f32.mrb[1].mxu1 }
 0x130   :  { %v237_v57 = vadd.f32 %v256_v53, %v227_v55 }
 0x132   :  { %418 = vtanh.f32 %v237_v57 }
 0x13c   :  { %v419_v58 = vpop.eup %418 }
 0x13d   :  { %239 = vst [vmem:[#allocation8] sm:$0xff] %v419_v58 }
 0x13e   :  { %497 = shalt.err (!%p494_p0)
}
 0x13f   :  { %s498_s3 = scalar_lea.hbm %s625_s4, 128 }
 0x140   :  { %p499_p1 = scmp.ne.s32.totalorder %s625_s4, %s498_s3  ;;  %p502_p2 = scmp.lt.u32.totalorder %s498_s3, %s625_s4 }
 0x142   :  { %p504_p3 = pnand %p502_p2, %p499_p1 }
 0x144   :  { %507 = shalt.err (!%p504_p3)
}
 0x145   :  { %249 = dma.vmem_to_hbm [thread:$0]  %s247_s27, 128, %s625_s4, [#allocation4]  }
 0x146   :  { %512 = dma.done.wait [#allocation4], 128  }
 0x147   :  { %513 = vsyncadd [#allocation4], 4294967168 }
 0x148   :  { %253 = vsyncpa [#allocation3], 1 }
 0x149   :  { %254 = vsyncpa [#allocation6], 1 }
 0x14a   :  { %255 = vsyncpa [#allocation4], 1 }

</bundles_post_ra>
